<compile_context>
chip_gen: v5e
topology: v5e:2x2
jax: 0.10.0
libtpu: 0.0.40
codegen_flags: <defaults>
</compile_context>

<pallas_src>
import functools

import jax
import jax.numpy as jnp
from jax.experimental import pallas as pl
from jax.experimental.pallas import tpu as pltpu

D_IN = 512
D_HID = 300
H_PAD = 384          # hidden dim padded to a multiple of 128


def _round_up(n, m):
    return ((n + m - 1) // m) * m


# --------------------------------------------------------------------------
# Kernel: one batch tile per grid step.
#   h   = relu(x @ W1 + b1)          (bf16 in, f32 acc, f32 bias)
#   out = h @ [W3|W4] + [b3|b4]      (single fused, lane-dense head matmul)
# --------------------------------------------------------------------------
def _mlp_kernel(x_ref, w1_ref, b1_ref, wh_ref, bh_ref, out_ref):
    h = jnp.dot(x_ref[...], w1_ref[...], preferred_element_type=jnp.float32)
    h = jnp.maximum(h + b1_ref[...], 0.0).astype(jnp.bfloat16)
    out_ref[...] = (jnp.dot(h, wh_ref[...], preferred_element_type=jnp.float32)
                    + bh_ref[...]).astype(out_ref.dtype)


# --------------------------------------------------------------------------
# One-time weight preprocessing: pad, fuse heads, cast to bf16.
# --------------------------------------------------------------------------
def prepare_params(params):
    w1, b1 = params["w1"], params["b1"]
    w3, b3 = params["w3"], params["b3"]
    w4, b4 = params["w4"], params["b4"]
    n1 = w3.shape[1]                       # 4
    n2 = w4.shape[1]                       # x_size * y_size
    n_pad = _round_up(n1 + n2, 128)        # lane-dense fused head width

    # hidden layer: pad columns 300 -> 384 with zeros
    w1p = jnp.zeros((D_IN, H_PAD), jnp.float32).at[:, :D_HID].set(w1)
    b1p = jnp.zeros((1, H_PAD), jnp.float32).at[:, :D_HID].set(b1.reshape(1, -1))

    # fused head [w3 | w4]: pad rows 300 -> 384, cols (n1+n2) -> n_pad
    wh = jnp.zeros((H_PAD, n_pad), jnp.float32)
    wh = wh.at[:D_HID, :n1].set(w3).at[:D_HID, n1:n1 + n2].set(w4)
    bh = jnp.zeros((1, n_pad), jnp.float32)
    bh = bh.at[:, :n1].set(b3.reshape(1, -1)).at[:, n1:n1 + n2].set(b4.reshape(1, -1))

    return {
        "w1": w1p.astype(jnp.bfloat16),    # bf16 weights (MXU native, half DMA)
        "b1": b1p,                         # f32 bias
        "wh": wh.astype(jnp.bfloat16),
        "bh": bh,
    }


# --------------------------------------------------------------------------
# Wrapper: batch grid, weights resident across grid steps.
# Returns (out_2, out_1) like the PyTorch module.
# --------------------------------------------------------------------------
def eval_mlp_pallas(x, prepared, *, n_out1, n_out2):
    B = x.shape[0]
    w1, b1, wh, bh = prepared["w1"], prepared["b1"], prepared["wh"], prepared["bh"]
    n_pad = wh.shape[1]

    # Batch tile: 512 rows max (safe for v7x 64 MiB VMEM), 8-row aligned.
    TB = min(512, _round_up(max(B, 8), 8))
    B_pad = _round_up(B, TB)

    xb = x.astype(jnp.bfloat16)
    if B_pad != B:
        xb = jnp.pad(xb, ((0, B_pad - B), (0, 0)))

    out = pl.pallas_call(
        _mlp_kernel,
        out_shape=jax.ShapeDtypeStruct((B_pad, n_pad), jnp.float32),
        grid=(B_pad // TB,),
        in_specs=[
            pl.BlockSpec((TB, D_IN), lambda i: (i, 0)),    # x tile, pipelined
            pl.BlockSpec(w1.shape, lambda i: (0, 0)),      # weights: constant
            pl.BlockSpec(b1.shape, lambda i: (0, 0)),      #   block index ->
            pl.BlockSpec(wh.shape, lambda i: (0, 0)),      #   VMEM-resident
            pl.BlockSpec(bh.shape, lambda i: (0, 0)),      #   across the grid
        ],
        out_specs=pl.BlockSpec((TB, n_pad), lambda i: (i, 0)),
        compiler_params=pltpu.CompilerParams(
            dimension_semantics=("parallel",)),            # megacore batch split
    )(xb, w1, b1, wh, bh)

    out1 = out[:B, :n_out1]                 # hidden3 head (B, 4)
    out2 = out[:B, n_out1:n_out1 + n_out2]  # hidden4 head (B, x_size*y_size)
    return out2, out1


# --------------------------------------------------------------------------
# Deterministic init matching nn.Linear shapes (stored as (in, out)).
# --------------------------------------------------------------------------
def init_params(key, grid_dims):
    x_size, y_size = grid_dims
    d_out1, d_out2 = 4, x_size * y_size
    ks = jax.random.split(key, 6)

    def linear(kw, kb, fan_in, fan_out):
        bound = 1.0 / jnp.sqrt(fan_in)
        w = jax.random.uniform(kw, (fan_in, fan_out), jnp.float32, -bound, bound)
        b = jax.random.uniform(kb, (1, fan_out), jnp.float32, -bound, bound)
        return w, b

    w1, b1 = linear(ks[0], ks[1], D_IN, D_HID)
    w3, b3 = linear(ks[2], ks[3], D_HID, d_out1)
    w4, b4 = linear(ks[4], ks[5], D_HID, d_out2)
    return {"w1": w1, "b1": b1, "w3": w3, "b3": b3, "w4": w4, "b4": b4}


def eval_mlp_ref(x, p):
    h = jnp.maximum(x @ p["w1"] + p["b1"], 0.0)
    return h @ p["w4"] + p["b4"], h @ p["w3"] + p["b3"]


if __name__ == "__main__":
    key = jax.random.PRNGKey(0)
    grid_dims = (8, 8)              # x_size * y_size = 64
    batch = 2

    k_params, k_x = jax.random.split(key)
    params = init_params(k_params, grid_dims)
    x = jax.random.normal(k_x, (batch, D_IN), jnp.float32)

    prepared = prepare_params(params)          # one-time pad/fuse/cast
    n1, n2 = 4, grid_dims[0] * grid_dims[1]

    fwd = jax.jit(functools.partial(eval_mlp_pallas, n_out1=n1, n_out2=n2))
    out2, out1 = fwd(x, prepared)
    jax.block_until_ready((out2, out1))

    ref2, ref1 = eval_mlp_ref(x, params)
    assert out2.shape == (batch, n2)
    assert out1.shape == (batch, n1)
    # bf16 weights/activations with f32 accumulation -> loosened tolerance.
    assert jnp.allclose(out2, ref2, atol=3e-2, rtol=3e-2)
    assert jnp.allclose(out1, ref1, atol=3e-2, rtol=3e-2)

    print("KERNEL_OK")
</pallas_src>

<mosaic_0001>
module attributes {stable_mosaic.version = 11 : i64} {
  func.func @_mlp_kernel(%arg0: i32, %arg1: memref<8x512xbf16, #tpu.memory_space<vmem>>, %arg2: memref<512x384xbf16, #tpu.memory_space<vmem>>, %arg3: memref<1x384xf32, #tpu.memory_space<vmem>>, %arg4: memref<384x128xbf16, #tpu.memory_space<vmem>>, %arg5: memref<1x128xf32, #tpu.memory_space<vmem>>, %arg6: memref<8x128xf32, #tpu.memory_space<vmem>>) attributes {dimension_semantics = [#tpu.dimension_semantics<parallel>], iteration_bounds = array<i64: 1>, scalar_prefetch = 0 : i64, scratch_operands = 0 : i64, tpu.core_type = #tpu.core_type<tc>, window_params = [{transform_indices = @transform_0, window_bounds = array<i64: 8, 512>}, {pipeline_mode = #tpu.pipeline_mode<synchronous>, transform_indices = @transform_1, window_bounds = array<i64: 512, 384>}, {pipeline_mode = #tpu.pipeline_mode<synchronous>, transform_indices = @transform_2, window_bounds = array<i64: 1, 384>}, {pipeline_mode = #tpu.pipeline_mode<synchronous>, transform_indices = @transform_3, window_bounds = array<i64: 384, 128>}, {pipeline_mode = #tpu.pipeline_mode<synchronous>, transform_indices = @transform_4, window_bounds = array<i64: 1, 128>}, {transform_indices = @transform_5, window_bounds = array<i64: 8, 128>}]} {
    %c0 = arith.constant 0 : index
    %c0_0 = arith.constant 0 : index
    %0 = vector.load %arg1[%c0, %c0_0] : memref<8x512xbf16, #tpu.memory_space<vmem>>, vector<8x512xbf16>
    %c0_1 = arith.constant 0 : index
    %c0_2 = arith.constant 0 : index
    %1 = vector.load %arg2[%c0_1, %c0_2] : memref<512x384xbf16, #tpu.memory_space<vmem>>, vector<512x384xbf16>
    %cst = arith.constant dense<0.000000e+00> : vector<8x384xf32>
    %2 = tpu.matmul %0, %1, %cst {dimension_numbers = #tpu.dot_dimension_numbers<[1], [0], [0], [1], [0, 0, 1, 1], [], []>} : vector<8x512xbf16>, vector<512x384xbf16>, vector<8x384xf32> -> vector<8x384xf32>
    %c0_3 = arith.constant 0 : index
    %c0_4 = arith.constant 0 : index
    %3 = vector.load %arg3[%c0_3, %c0_4] : memref<1x384xf32, #tpu.memory_space<vmem>>, vector<1x384xf32>
    %4 = vector.broadcast %3 : vector<1x384xf32> to vector<8x384xf32>
    %5 = arith.addf %2, %4 : vector<8x384xf32>
    %cst_5 = arith.constant 0.000000e+00 : f32
    %6 = vector.broadcast %cst_5 : f32 to vector<8x384xf32>
    %7 = arith.maximumf %5, %6 : vector<8x384xf32>
    %8 = arith.truncf %7 : vector<8x384xf32> to vector<8x384xbf16>
    %c0_6 = arith.constant 0 : index
    %c0_7 = arith.constant 0 : index
    %9 = vector.load %arg4[%c0_6, %c0_7] : memref<384x128xbf16, #tpu.memory_space<vmem>>, vector<384x128xbf16>
    %cst_8 = arith.constant dense<0.000000e+00> : vector<8x128xf32>
    %10 = tpu.matmul %8, %9, %cst_8 {dimension_numbers = #tpu.dot_dimension_numbers<[1], [0], [0], [1], [0, 0, 1, 1], [], []>} : vector<8x384xbf16>, vector<384x128xbf16>, vector<8x128xf32> -> vector<8x128xf32>
    %c0_9 = arith.constant 0 : index
    %c0_10 = arith.constant 0 : index
    %11 = vector.load %arg5[%c0_9, %c0_10] : memref<1x128xf32, #tpu.memory_space<vmem>>, vector<1x128xf32>
    %12 = vector.broadcast %11 : vector<1x128xf32> to vector<8x128xf32>
    %13 = arith.addf %10, %12 : vector<8x128xf32>
    %c0_11 = arith.constant 0 : index
    %c0_12 = arith.constant 0 : index
    %14 = vector.load %arg6[%c0_11, %c0_12] : memref<8x128xf32, #tpu.memory_space<vmem>>, vector<8x128xf32>
    tpu.vector_store %arg6[%c0_11, %c0_12], %13 {strides = array<i32>} : memref<8x128xf32, #tpu.memory_space<vmem>>, vector<8x128xf32>,
    return
  }
  func.func @transform_0(%arg0: i32) -> (i32, i32) {
    %c0_i32 = arith.constant 0 : i32
    %c0_i32_0 = arith.constant 0 : i32
    return %arg0, %c0_i32 : i32, i32
  }
  func.func @transform_1(%arg0: i32) -> (i32, i32) {
    %c0_i32 = arith.constant 0 : i32
    %c0_i32_0 = arith.constant 0 : i32
    %c0_i32_1 = arith.constant 0 : i32
    return %c0_i32, %c0_i32_0 : i32, i32
  }
  func.func @transform_2(%arg0: i32) -> (i32, i32) {
    %c0_i32 = arith.constant 0 : i32
    %c0_i32_0 = arith.constant 0 : i32
    %c0_i32_1 = arith.constant 0 : i32
    return %c0_i32, %c0_i32_0 : i32, i32
  }
  func.func @transform_3(%arg0: i32) -> (i32, i32) {
    %c0_i32 = arith.constant 0 : i32
    %c0_i32_0 = arith.constant 0 : i32
    %c0_i32_1 = arith.constant 0 : i32
    return %c0_i32, %c0_i32_0 : i32, i32
  }
  func.func @transform_4(%arg0: i32) -> (i32, i32) {
    %c0_i32 = arith.constant 0 : i32
    %c0_i32_0 = arith.constant 0 : i32
    %c0_i32_1 = arith.constant 0 : i32
    return %c0_i32, %c0_i32_0 : i32, i32
  }
  func.func @transform_5(%arg0: i32) -> (i32, i32) {
    %c0_i32 = arith.constant 0 : i32
    %c0_i32_0 = arith.constant 0 : i32
    return %arg0, %c0_i32 : i32, i32
  }
}

</mosaic_0001>

<bundles_post_ra>
// kernel: eval_mlp_pallas.1
= control target key start
LH: loop header
LB: loop body
LE: loop exit
PB: predicated region body
PF: predicated region fallthrough
CT: control target
= control target key end

     0   :  { %10 = vsyncpa [#allocation3], 0  ;;  %s1856_s0 = inlined_call_operand.vmem [shape: bf16[8,512], index: 0, kind: input, shape index: {}]   ;;  %s1857_s1 = inlined_call_operand.hbm [shape: bf16[512,384], index: 1, kind: input, shape index: {}]   ;;  %s1858_s2 = inlined_call_operand.vmem [shape: f32[1,384], index: 2, kind: input, shape index: {}]   ;;  %s1859_s3 = inlined_call_operand.hbm [shape: bf16[384,128], index: 3, kind: input, shape index: {}]   ;;  %s1860_s4 = inlined_call_operand.vmem [shape: f32[1,128], index: 4, kind: input, shape index: {}]   ;;  %s1861_s5 = inlined_call_operand.vmem [shape: f32[8,128], index: 5, kind: output, shape index: {}]  }
   0x1   :  { %s18_s20 = sshll.u32 %s1857_s1, 4  ;;  %s19_s20 = int_to_ptr.hbm [resolvable:$true] %s18_s20 }
   0x2   :  { %11 = vsyncpa [#allocation5], 0  ;;  %s1779_s21 = smov [#allocation2]   ;;  %s33_s25 = sshll.u32 %s1859_s3, 4  ;;  %s34_s25 = int_to_ptr.hbm [resolvable:$true] %s33_s25 }
   0x3   :  { %s20_s22 = sshll.u32 %s1779_s21, 4  ;;  %s1780_s26 = smov 192   ;;  %s21_s22 = int_to_ptr.vmem [resolvable:$true] %s20_s22 }
   0x4   :  { %s1781_s27 = smov 12   ;;  %s1782_s28 = smov [#allocation4]  }
   0x5   :  { %26 = dma.hbm_to_vmem [thread:$0]  %s19_s20, 12288, %s21_s22, [#allocation3], %s1780_s26, %s1780_s26, %s1781_s27  }
   0x6   :  { %s35_s29 = sshll.u32 %s1782_s28, 4  ;;  %s1783_s30 = smov 64   ;;  %s36_s29 = int_to_ptr.vmem [resolvable:$true] %s35_s29 }
   0x7   :  { %s1784_s6 = smov 4  }
   0x8   :  { %41 = dma.hbm_to_vmem [thread:$0]  %s34_s25, 3072, %s36_s29, [#allocation5], %s1783_s30, %s1783_s30, %s1784_s6  }
   0x9   :  { %1775 = dma.done.wait [#allocation3], 12288  }
   0xa   :  { %1776 = vsyncadd [#allocation3], 4294955008 }
   0xb   :  { %1777 = dma.done.wait [#allocation5], 3072  }
   0xc   :  { %1778 = vsyncadd [#allocation5], 4294964224  ;;  %v1206_v0 = vld [vmem:[#allocation2 + $0xa8] sm:$0xf]  ;;  %v1622_v1 = vld [vmem:[#allocation2 + $0xb0] sm:$0xf0] }
   0xd   :  { %v1302_v2 = vld [vmem:[#allocation2 + $0x168] sm:$0xf]  ;;  %v1207_v3 = vor.u32 %v1622_v1, %v1206_v0  ;;  %v1646_v4 = vld [vmem:[#allocation2 + $0x170] sm:$0xf0]  ;;  %v1194_v11 = vld [vmem:[#allocation2 + $0x90] sm:$0xf] }
   0xe   :  { %v1398_v5 = vld [vmem:[#allocation2 + $0x228] sm:$0xf]  ;;  %v1670_v6 = vld [vmem:[#allocation2 + $0x230] sm:$0xf0]  ;;  %v1303_v7 = vor.u32 %v1646_v4, %v1302_v2  ;;  %v1619_v13 = vld [vmem:[#allocation2 + $0x98] sm:$0xf0] }
   0xf   :  { %v1399_v8 = vor.u32 %v1670_v6, %v1398_v5  ;;  %v1494_v9 = vld [vmem:[#allocation2 + $0x2e8] sm:$0xf]  ;;  %v1694_v10 = vld [vmem:[#allocation2 + $0x2f0] sm:$0xf0]  ;;  %716 = vmatpush.bf16.msra.mxu0 %v1207_v3  ;;  %v1290_v14 = vld [vmem:[#allocation2 + $0x150] sm:$0xf]  ;;  %v1195_v16 = vor.u32 %v1619_v13, %v1194_v11 }
  0x10   :  { %v1495_v12 = vor.u32 %v1694_v10, %v1494_v9  ;;  %v1643_v15 = vld [vmem:[#allocation2 + $0x158] sm:$0xf0]  ;;  %729 = vmatpush.bf16.msra.mxu1 %v1303_v7  ;;  %v1386_v18 = vld [vmem:[#allocation2 + $0x210] sm:$0xf]  ;;  %v1182_v23 = vld [vmem:[#allocation2 + $0x78] sm:$0xf] }
  0x11   :  { %742 = vmatpush.bf16.msra.mxu2 %v1399_v8  ;;  %v1291_v17 = vor.u32 %v1643_v15, %v1290_v14  ;;  %v1667_v19 = vld [vmem:[#allocation2 + $0x218] sm:$0xf0]  ;;  %v1482_v20 = vld [vmem:[#allocation2 + $0x2d0] sm:$0xf]  ;;  %v1616_v24 = vld [vmem:[#allocation2 + $0x80] sm:$0xf0] }
  0x12   :  { %755 = vmatpush.bf16.msra.mxu3 %v1495_v12  ;;  %v1387_v21 = vor.u32 %v1667_v19, %v1386_v18  ;;  %v1691_v22 = vld [vmem:[#allocation2 + $0x2d8] sm:$0xf0]  ;;  %v1278_v26 = vld [vmem:[#allocation2 + $0x138] sm:$0xf]  ;;  %v1640_v27 = vld [vmem:[#allocation2 + $0x140] sm:$0xf0]  ;;  %v1183_v29 = vor.u32 %v1616_v24, %v1182_v23 }
  0x13   :  { %v1483_v25 = vor.u32 %v1691_v22, %v1482_v20  ;;  %v1374_v28 = vld [vmem:[#allocation2 + $0x1f8] sm:$0xf]  ;;  %717 = vmatpush.bf16.msra.mxu0 %v1195_v16  ;;  %v1664_v30 = vld [vmem:[#allocation2 + $0x200] sm:$0xf0]  ;;  %v1279_v33 = vor.u32 %v1640_v27, %v1278_v26  ;;  %v1170_v35 = vld [vmem:[#allocation2 + $0x60] sm:$0xf] }
  0x14   :  { %v1470_v31 = vld [vmem:[#allocation2 + $0x2b8] sm:$0xf]  ;;  %v1688_v32 = vld [vmem:[#allocation2 + $0x2c0] sm:$0xf0]  ;;  %730 = vmatpush.bf16.msra.mxu1 %v1291_v17  ;;  %v1375_v34 = vor.u32 %v1664_v30, %v1374_v28  ;;  %v1613_v36 = vld [vmem:[#allocation2 + $0x68] sm:$0xf0] }
  0x15   :  { %743 = vmatpush.bf16.msra.mxu2 %v1387_v21  ;;  %v1266_v37 = vld [vmem:[#allocation2 + $0x120] sm:$0xf]  ;;  %v1471_v38 = vor.u32 %v1688_v32, %v1470_v31  ;;  %v1637_v39 = vld [vmem:[#allocation2 + $0x128] sm:$0xf0]  ;;  %v1171_v44 = vor.u32 %v1613_v36, %v1170_v35  ;;  %v1158_v47 = vld [vmem:[#allocation2 + $0x48] sm:$0xf] }
  0x16   :  { %756 = vmatpush.bf16.msra.mxu3 %v1483_v25  ;;  %v1362_v40 = vld [vmem:[#allocation2 + $0x1e0] sm:$0xf]  ;;  %v1661_v41 = vld [vmem:[#allocation2 + $0x1e8] sm:$0xf0]  ;;  %v1267_v45 = vor.u32 %v1637_v39, %v1266_v37  ;;  %v1610_v48 = vld [vmem:[#allocation2 + $0x50] sm:$0xf0] }
  0x17   :  { %v1458_v42 = vld [vmem:[#allocation2 + $0x2a0] sm:$0xf]  ;;  %v1685_v43 = vld [vmem:[#allocation2 + $0x2a8] sm:$0xf0]  ;;  %718 = vmatpush.bf16.msra.mxu0 %v1183_v29  ;;  %v1363_v46 = vor.u32 %v1661_v41, %v1362_v40  ;;  %v1254_v49 = vld [vmem:[#allocation2 + $0x108] sm:$0xf]  ;;  %v1159_v56 = vor.u32 %v1610_v48, %v1158_v47 }
  0x18   :  { %731 = vmatpush.bf16.msra.mxu1 %v1279_v33  ;;  %v1459_v50 = vor.u32 %v1685_v43, %v1458_v42  ;;  %v1634_v51 = vld [vmem:[#allocation2 + $0x110] sm:$0xf0]  ;;  %v1350_v52 = vld [vmem:[#allocation2 + $0x1c8] sm:$0xf]  ;;  %v1146_v59 = vld [vmem:[#allocation2 + $0x30] sm:$0xf] }
  0x19   :  { %744 = vmatpush.bf16.msra.mxu2 %v1375_v34  ;;  %v1658_v53 = vld [vmem:[#allocation2 + $0x1d0] sm:$0xf0]  ;;  %v1446_v54 = vld [vmem:[#allocation2 + $0x288] sm:$0xf]  ;;  %v1255_v57 = vor.u32 %v1634_v51, %v1254_v49  ;;  %v1607_v60 = vld [vmem:[#allocation2 + $0x38] sm:$0xf0] }
  0x1a   :  { %757 = vmatpush.bf16.msra.mxu3 %v1471_v38  ;;  %v1682_v55 = vld [vmem:[#allocation2 + $0x290] sm:$0xf0]  ;;  %v1351_v58 = vor.u32 %v1658_v53, %v1350_v52  ;;  %v1242_v61 = vld [vmem:[#allocation2 + $0xf0] sm:$0xf]  ;;  %v1631_v63 = vld [vmem:[#allocation2 + $0xf8] sm:$0xf0]  ;;  %v1147_v4 = vor.u32 %v1607_v60, %v1146_v59 }
  0x1b   :  { %719 = vmatpush.bf16.msra.mxu0 %v1171_v44  ;;  %v1447_v62 = vor.u32 %v1682_v55, %v1446_v54  ;;  %v1338_v0 = vld [vmem:[#allocation2 + $0x1b0] sm:$0xf]  ;;  %v1655_v1 = vld [vmem:[#allocation2 + $0x1b8] sm:$0xf0]  ;;  %v1243_v5 = vor.u32 %v1631_v63, %v1242_v61  ;;  %v1134_v7 = vld [vmem:[#allocation2 + $0x18] sm:$0xf] }
  0x1c   :  { %732 = vmatpush.bf16.msra.mxu1 %v1267_v45  ;;  %v1434_v2 = vld [vmem:[#allocation2 + $0x270] sm:$0xf]  ;;  %v1679_v3 = vld [vmem:[#allocation2 + $0x278] sm:$0xf0]  ;;  %v1339_v6 = vor.u32 %v1655_v1, %v1338_v0  ;;  %v1604_v8 = vld [vmem:[#allocation2 + $0x20] sm:$0xf0] }
  0x1d   :  { %745 = vmatpush.bf16.msra.mxu2 %v1363_v46  ;;  %v1230_v9 = vld [vmem:[#allocation2 + $0xd8] sm:$0xf]  ;;  %v1435_v10 = vor.u32 %v1679_v3, %v1434_v2  ;;  %v1628_v11 = vld [vmem:[#allocation2 + $0xe0] sm:$0xf0]  ;;  %v1135_v16 = vor.u32 %v1604_v8, %v1134_v7  ;;  %v1122_v17 = vld [vmem:[#allocation2] sm:$0xf] }
  0x1e   :  { %758 = vmatpush.bf16.msra.mxu3 %v1459_v50  ;;  %v1326_v12 = vld [vmem:[#allocation2 + $0x198] sm:$0xf]  ;;  %v1652_v13 = vld [vmem:[#allocation2 + $0x1a0] sm:$0xf0]  ;;  %v1601_v18 = vld [vmem:[#allocation2 + $0x8] sm:$0xf0]  ;;  %v1231_v19 = vor.u32 %v1628_v11, %v1230_v9 }
  0x1f   :  { %720 = vmatpush.bf16.msra.mxu0 %v1159_v56  ;;  %v1422_v14 = vld [vmem:[#allocation2 + $0x258] sm:$0xf]  ;;  %v1676_v15 = vld [vmem:[#allocation2 + $0x260] sm:$0xf0]  ;;  %v1327_v20 = vor.u32 %v1652_v13, %v1326_v12  ;;  %v1218_v21 = vld [vmem:[#allocation2 + $0xc0] sm:$0xf]  ;;  %v1123_v31 = vor.u32 %v1601_v18, %v1122_v17 }
  0x20   :  { %733 = vmatpush.bf16.msra.mxu1 %v1255_v57  ;;  %v1625_v22 = vld [vmem:[#allocation2 + $0xc8] sm:$0xf0]  ;;  %v1314_v23 = vld [vmem:[#allocation2 + $0x180] sm:$0xf]  ;;  %v1423_v24 = vor.u32 %v1676_v15, %v1422_v14  ;;  %v1208_v29 = vld [vmem:[#allocation2 + $0xb4] sm:$0xf0] }
  0x21   :  { %746 = vmatpush.bf16.msra.mxu2 %v1351_v58  ;;  %v1649_v25 = vld [vmem:[#allocation2 + $0x188] sm:$0xf0]  ;;  %v1410_v26 = vld [vmem:[#allocation2 + $0x240] sm:$0xf]  ;;  %v1304_v32 = vld [vmem:[#allocation2 + $0x174] sm:$0xf0]  ;;  %v1219_v35 = vor.u32 %v1625_v22, %v1218_v21 }
  0x22   :  { %759 = vmatpush.bf16.msra.mxu3 %v1447_v62  ;;  %v1673_v27 = vld [vmem:[#allocation2 + $0x248] sm:$0xf0]  ;;  %v1400_v34 = vld [vmem:[#allocation2 + $0x234] sm:$0xf0]  ;;  %v1315_v36 = vor.u32 %v1649_v25, %v1314_v23  ;;  %v1618_v43 = vld [vmem:[#allocation2 + $0x94] sm:$0xf] }
  0x23   :  { %721 = vmatpush.bf16.msra.mxu0 %v1147_v4  ;;  %v1621_v28 = vld [vmem:[#allocation2 + $0xac] sm:$0xf]  ;;  %v1496_v38 = vld [vmem:[#allocation2 + $0x2f4] sm:$0xf0]  ;;  %v1411_v39 = vor.u32 %v1673_v27, %v1410_v26  ;;  %v1196_v44 = vld [vmem:[#allocation2 + $0x9c] sm:$0xf0] }
  0x24   :  { %734 = vmatpush.bf16.msra.mxu1 %v1243_v5  ;;  %v1645_v30 = vld [vmem:[#allocation2 + $0x16c] sm:$0xf]  ;;  %v1211_v40 = vor.u32 %v1621_v28, %v1208_v29  ;;  %v1642_v45 = vld [vmem:[#allocation2 + $0x154] sm:$0xf]  ;;  %v1292_v47 = vld [vmem:[#allocation2 + $0x15c] sm:$0xf0]  ;;  %v1199_v53 = vor.u32 %v1618_v43, %v1196_v44 }
  0x25   :  { %747 = vmatpush.bf16.msra.mxu2 %v1339_v6  ;;  %v1669_v33 = vld [vmem:[#allocation2 + $0x22c] sm:$0xf]  ;;  %v1307_v41 = vor.u32 %v1645_v30, %v1304_v32  ;;  %v1666_v48 = vld [vmem:[#allocation2 + $0x214] sm:$0xf]  ;;  %v1388_v49 = vld [vmem:[#allocation2 + $0x21c] sm:$0xf0]  ;;  %v1295_v57 = vor.u32 %v1642_v45, %v1292_v47 }
  0x26   :  { %760 = vmatpush.bf16.msra.mxu3 %v1435_v10  ;;  %v1693_v37 = vld [vmem:[#allocation2 + $0x2ec] sm:$0xf]  ;;  %v1403_v42 = vor.u32 %v1669_v33, %v1400_v34  ;;  %v1690_v50 = vld [vmem:[#allocation2 + $0x2d4] sm:$0xf]  ;;  %v1484_v51 = vld [vmem:[#allocation2 + $0x2dc] sm:$0xf0]  ;;  %v1391_v58 = vor.u32 %v1666_v48, %v1388_v49 }
  0x27   :  { %722 = vmatpush.bf16.msra.mxu0 %v1135_v16  ;;  %v1499_v46 = vor.u32 %v1693_v37, %v1496_v38  ;;  %v53_v52 = vld [vmem:[%s1856_s0 + $0x8] sm:$0xff]  ;;  %v1615_v54 = vld [vmem:[#allocation2 + $0x7c] sm:$0xf]  ;;  %v1487_v62 = vor.u32 %v1690_v50, %v1484_v51  ;;  %v52_v2 = vld [vmem:[%s1856_s0] sm:$0xff] }
  0x28   :  { %735 = vmatpush.bf16.msra.mxu1 %v1231_v19  ;;  %v194_v55 = vunpack.c.l.b16 %v53_v52  ;;  %v195_v56 = vunpack.c.h.b16 %v53_v52  ;;  %v1184_v59 = vld [vmem:[#allocation2 + $0x84] sm:$0xf0]  ;;  %v1639_v60 = vld [vmem:[#allocation2 + $0x13c] sm:$0xf]  ;;  %v192_v5 = vunpack.c.l.b16 %v52_v2  ;;  %v193_v7 = vunpack.c.h.b16 %v52_v2  ;;  %v1612_v11 = vld [vmem:[#allocation2 + $0x64] sm:$0xf] }
  0x29   :  { %748 = vmatpush.bf16.msra.mxu2 %v1327_v20  ;;  %v1280_v61 = vld [vmem:[#allocation2 + $0x144] sm:$0xf0]  ;;  %v1663_v63 = vld [vmem:[#allocation2 + $0x1fc] sm:$0xf]  ;;  %v1187_v8 = vor.u32 %v1615_v54, %v1184_v59  ;;  %v1172_v12 = vld [vmem:[#allocation2 + $0x6c] sm:$0xf0] }
  0x2a   :  { %761 = vmatpush.bf16.msra.mxu3 %v1423_v24  ;;  %v1376_v0 = vld [vmem:[#allocation2 + $0x204] sm:$0xf0]  ;;  %v1824_v1 = vpack.c.b16 %v194_v55, %v194_v55  ;;  %v1687_v3 = vld [vmem:[#allocation2 + $0x2bc] sm:$0xf]  ;;  %v1829_v6 = vpack.c.b16 %v195_v56, %v195_v56  ;;  %v1283_v9 = vor.u32 %v1639_v60, %v1280_v61  ;;  %v1636_v13 = vld [vmem:[#allocation2 + $0x124] sm:$0xf]  ;;  %v1832_v14 = vpack.c.b16 %v192_v5, %v192_v5 }
  0x2b   :  { %723 = vmatpush.bf16.msra.mxu0 %v1123_v31  ;;  %v1472_v4 = vld [vmem:[#allocation2 + $0x2c4] sm:$0xf0]  ;;  %v1379_v10 = vor.u32 %v1663_v63, %v1376_v0  ;;  %v1834_v15 = vpack.c.b16 %v193_v7, %v193_v7  ;;  %v1268_v17 = vld [vmem:[#allocation2 + $0x12c] sm:$0xf0]  ;;  %v1660_v18 = vld [vmem:[#allocation2 + $0x1e4] sm:$0xf]  ;;  %v1175_v22 = vor.u32 %v1612_v11, %v1172_v12 }
  0x2c   :  { %736 = vmatpush.bf16.msra.mxu1 %v1219_v35  ;;  %v1475_v16 = vor.u32 %v1687_v3, %v1472_v4  ;;  %v1364_v19 = vld [vmem:[#allocation2 + $0x1ec] sm:$0xf0]  ;;  %v1684_v20 = vld [vmem:[#allocation2 + $0x2a4] sm:$0xf]  ;;  %v1271_v23 = vor.u32 %v1636_v13, %v1268_v17  ;;  %v1609_v25 = vld [vmem:[#allocation2 + $0x4c] sm:$0xf] }
  0x2d   :  { %749 = vmatpush.bf16.msra.mxu2 %v1315_v36  ;;  %v1460_v21 = vld [vmem:[#allocation2 + $0x2ac] sm:$0xf0]  ;;  %v1367_v24 = vor.u32 %v1660_v18, %v1364_v19  ;;  %v1160_v26 = vld [vmem:[#allocation2 + $0x54] sm:$0xf0]  ;;  %v1633_v27 = vld [vmem:[#allocation2 + $0x10c] sm:$0xf] }
  0x2e   :  { %762 = vmatpush.bf16.msra.mxu3 %v1411_v39  ;;  %724 = vmatmul.bf16.vlgmr.msra.gmra.mxu0 %v1832_v14  ;;  %v1463_v28 = vor.u32 %v1684_v20, %v1460_v21  ;;  %v1256_v29 = vld [vmem:[#allocation2 + $0x114] sm:$0xf0]  ;;  %v1657_v30 = vld [vmem:[#allocation2 + $0x1cc] sm:$0xf]  ;;  %v1163_v34 = vor.u32 %v1609_v25, %v1160_v26  ;;  %v1606_v37 = vld [vmem:[#allocation2 + $0x34] sm:$0xf] }
  0x2f   :  { %768 = vmatpush.bf16.msrb.mxu0 %v1211_v40  ;;  %737 = vmatmul.bf16.vlgmr.msra.gmra.mxu1 %v1834_v15  ;;  %v1352_v31 = vld [vmem:[#allocation2 + $0x1d4] sm:$0xf0]  ;;  %v1681_v32 = vld [vmem:[#allocation2 + $0x28c] sm:$0xf]  ;;  %v1259_v35 = vor.u32 %v1633_v27, %v1256_v29  ;;  %v1148_v38 = vld [vmem:[#allocation2 + $0x3c] sm:$0xf0] }
  0x30   :  { %781 = vmatpush.bf16.msrb.mxu1 %v1307_v41  ;;  %750 = vmatmul.bf16.vlgmr.msra.gmra.mxu2 %v1824_v1  ;;  %v1448_v33 = vld [vmem:[#allocation2 + $0x294] sm:$0xf0]  ;;  %v1355_v36 = vor.u32 %v1657_v30, %v1352_v31  ;;  %v1630_v39 = vld [vmem:[#allocation2 + $0xf4] sm:$0xf]  ;;  %v1244_v41 = vld [vmem:[#allocation2 + $0xfc] sm:$0xf0] }
  0x31   :  { %794 = vmatpush.bf16.msrb.mxu2 %v1403_v42  ;;  %763 = vmatmul.bf16.vlgmr.msra.gmra.mxu3 %v1829_v6  ;;  %v1451_v40 = vor.u32 %v1681_v32, %v1448_v33  ;;  %v1654_v42 = vld [vmem:[#allocation2 + $0x1b4] sm:$0xf]  ;;  %v1340_v43 = vld [vmem:[#allocation2 + $0x1bc] sm:$0xf0]  ;;  %v1247_v47 = vor.u32 %v1630_v39, %v1244_v41  ;;  %v1603_v49 = vld [vmem:[#allocation2 + $0x1c] sm:$0xf] }
  0x32   :  { %807 = vmatpush.bf16.msrb.mxu3 %v1499_v46  ;;  %v1678_v44 = vld [vmem:[#allocation2 + $0x274] sm:$0xf]  ;;  %v1436_v45 = vld [vmem:[#allocation2 + $0x27c] sm:$0xf0]  ;;  %v1151_v46 = vor.u32 %v1606_v37, %v1148_v38  ;;  %v1343_v48 = vor.u32 %v1654_v42, %v1340_v43  ;;  %v1136_v50 = vld [vmem:[#allocation2 + $0x24] sm:$0xf0] }
  0x33   :  { %769 = vmatpush.bf16.msrb.mxu0 %v1199_v53  ;;  %v1627_v51 = vld [vmem:[#allocation2 + $0xdc] sm:$0xf]  ;;  %v1439_v52 = vor.u32 %v1678_v44, %v1436_v45  ;;  %v1232_v53 = vld [vmem:[#allocation2 + $0xe4] sm:$0xf0]  ;;  %v1600_v59 = vld [vmem:[#allocation2 + $0x4] sm:$0xf] }
  0x34   :  { %782 = vmatpush.bf16.msrb.mxu1 %v1295_v57  ;;  %v1651_v54 = vld [vmem:[#allocation2 + $0x19c] sm:$0xf]  ;;  %v1328_v55 = vld [vmem:[#allocation2 + $0x1a4] sm:$0xf0]  ;;  %v1124_v60 = vld [vmem:[#allocation2 + $0xc] sm:$0xf0]  ;;  %v1235_v61 = vor.u32 %v1627_v51, %v1232_v53 }
  0x35   :  { %795 = vmatpush.bf16.msrb.mxu2 %v1391_v58  ;;  %v1675_v56 = vld [vmem:[#allocation2 + $0x25c] sm:$0xf]  ;;  %v1424_v57 = vld [vmem:[#allocation2 + $0x264] sm:$0xf0]  ;;  %v1139_v58 = vor.u32 %v1603_v49, %v1136_v50  ;;  %v1624_v63 = vld [vmem:[#allocation2 + $0xc4] sm:$0xf]  ;;  %v1127_v11 = vor.u32 %v1600_v59, %v1124_v60 }
  0x36   :  { %808 = vmatpush.bf16.msrb.mxu3 %v1487_v62  ;;  %v1331_v62 = vor.u32 %v1651_v54, %v1328_v55  ;;  %v1220_v0 = vld [vmem:[#allocation2 + $0xcc] sm:$0xf0]  ;;  %v1648_v2 = vld [vmem:[#allocation2 + $0x184] sm:$0xf]  ;;  %v1427_v3 = vor.u32 %v1675_v56, %v1424_v57  ;;  %v1647_v12 = vld [vmem:[#allocation2 + $0x178] sm:$0xf0] }
  0x37   :  { %770 = vmatpush.bf16.msrb.mxu0 %v1187_v8  ;;  %v1316_v4 = vld [vmem:[#allocation2 + $0x18c] sm:$0xf0]  ;;  %v1672_v5 = vld [vmem:[#allocation2 + $0x244] sm:$0xf]  ;;  %v1223_v17 = vor.u32 %v1624_v63, %v1220_v0  ;;  %v1695_v20 = vld [vmem:[#allocation2 + $0x2f8] sm:$0xf0] }
  0x38   :  { %783 = vmatpush.bf16.msrb.mxu1 %v1283_v9  ;;  %v1412_v7 = vld [vmem:[#allocation2 + $0x24c] sm:$0xf0]  ;;  %v1623_v9 = vld [vmem:[#allocation2 + $0xb8] sm:$0xf0]  ;;  %v1319_v18 = vor.u32 %v1648_v2, %v1316_v4  ;;  %v1202_v25 = vld [vmem:[#allocation2 + $0x98] sm:$0xf] }
  0x39   :  { %796 = vmatpush.bf16.msrb.mxu2 %v1379_v10  ;;  %v1214_v8 = vld [vmem:[#allocation2 + $0xb0] sm:$0xf]  ;;  %v1415_v21 = vor.u32 %v1672_v5, %v1412_v7  ;;  %v1620_v26 = vld [vmem:[#allocation2 + $0xa0] sm:$0xf0]  ;;  %v1298_v27 = vld [vmem:[#allocation2 + $0x158] sm:$0xf] }
  0x3a   :  { %809 = vmatpush.bf16.msrb.mxu3 %v1475_v16  ;;  %v1310_v10 = vld [vmem:[#allocation2 + $0x170] sm:$0xf]  ;;  %v1671_v16 = vld [vmem:[#allocation2 + $0x238] sm:$0xf0]  ;;  %v1644_v29 = vld [vmem:[#allocation2 + $0x160] sm:$0xf0] }
  0x3b   :  { %771 = vmatpush.bf16.msrb.mxu0 %v1175_v22  ;;  %v1406_v13 = vld [vmem:[#allocation2 + $0x230] sm:$0xf]  ;;  %v1215_v22 = vor.u32 %v1623_v9, %v1214_v8  ;;  %v1394_v30 = vld [vmem:[#allocation2 + $0x218] sm:$0xf]  ;;  %v1668_v31 = vld [vmem:[#allocation2 + $0x220] sm:$0xf0] }
  0x3c   :  { %784 = vmatpush.bf16.msrb.mxu1 %v1271_v23  ;;  %v1502_v19 = vld [vmem:[#allocation2 + $0x2f0] sm:$0xf]  ;;  %v1311_v23 = vor.u32 %v1647_v12, %v1310_v10  ;;  %v1490_v32 = vld [vmem:[#allocation2 + $0x2d8] sm:$0xf]  ;;  %v1692_v33 = vld [vmem:[#allocation2 + $0x2e0] sm:$0xf0]  ;;  %v1395_v37 = vor.u32 %v1668_v31, %v1394_v30 }
  0x3d   :  { %797 = vmatpush.bf16.msrb.mxu2 %v1367_v24  ;;  %v1407_v24 = vor.u32 %v1671_v16, %v1406_v13  ;;  %v1617_v38 = vld [vmem:[#allocation2 + $0x88] sm:$0xf0]  ;;  %v1286_v39 = vld [vmem:[#allocation2 + $0x140] sm:$0xf]  ;;  %v1491_v41 = vor.u32 %v1692_v33, %v1490_v32  ;;  %v1178_v49 = vld [vmem:[#allocation2 + $0x68] sm:$0xf] }
  0x3e   :  { %810 = vmatpush.bf16.msrb.mxu3 %v1463_v28  ;;  %v1503_v28 = vor.u32 %v1695_v20, %v1502_v19  ;;  %v1382_v42 = vld [vmem:[#allocation2 + $0x200] sm:$0xf]  ;;  %v1665_v43 = vld [vmem:[#allocation2 + $0x208] sm:$0xf0]  ;;  %v1614_v50 = vld [vmem:[#allocation2 + $0x70] sm:$0xf0] }
  0x3f   :  { %772 = vmatpush.bf16.msrb.mxu0 %v1163_v34  ;;  %v1203_v34 = vor.u32 %v1620_v26, %v1202_v25  ;;  %v1478_v44 = vld [vmem:[#allocation2 + $0x2c0] sm:$0xf]  ;;  %v1689_v45 = vld [vmem:[#allocation2 + $0x2c8] sm:$0xf0]  ;;  %v1274_v51 = vld [vmem:[#allocation2 + $0x128] sm:$0xf] }
  0x40   :  { %785 = vmatpush.bf16.msrb.mxu1 %v1259_v35  ;;  %v1190_v35 = vld [vmem:[#allocation2 + $0x80] sm:$0xf]  ;;  %v1638_v53 = vld [vmem:[#allocation2 + $0x130] sm:$0xf0]  ;;  %v1370_v54 = vld [vmem:[#allocation2 + $0x1e8] sm:$0xf] }
  0x41   :  { %798 = vmatpush.bf16.msrb.mxu2 %v1355_v36  ;;  %v1299_v36 = vor.u32 %v1644_v29, %v1298_v27  ;;  %v1662_v55 = vld [vmem:[#allocation2 + $0x1f0] sm:$0xf0]  ;;  %v1466_v56 = vld [vmem:[#allocation2 + $0x2a8] sm:$0xf]  ;;  %v1275_v59 = vor.u32 %v1638_v53, %v1274_v51  ;;  %v1262_v63 = vld [vmem:[#allocation2 + $0x110] sm:$0xf] }
  0x42   :  { %811 = vmatpush.bf16.msrb.mxu3 %v1451_v40  ;;  %v1641_v40 = vld [vmem:[#allocation2 + $0x148] sm:$0xf0]  ;;  %v1686_v57 = vld [vmem:[#allocation2 + $0x2b0] sm:$0xf0]  ;;  %v1371_v60 = vor.u32 %v1662_v55, %v1370_v54  ;;  %v1635_v2 = vld [vmem:[#allocation2 + $0x118] sm:$0xf0] }
  0x43   :  { %773 = vmatpush.bf16.msrb.mxu0 %v1151_v46  ;;  %v1191_v46 = vor.u32 %v1617_v38, %v1190_v35  ;;  %v1467_v0 = vor.u32 %v1686_v57, %v1466_v56  ;;  %v1659_v4 = vld [vmem:[#allocation2 + $0x1d8] sm:$0xf0]  ;;  %v1454_v5 = vld [vmem:[#allocation2 + $0x290] sm:$0xf]  ;;  %v1263_v9 = vor.u32 %v1635_v2, %v1262_v63  ;;  %v1608_v12 = vld [vmem:[#allocation2 + $0x40] sm:$0xf0] }
  0x44   :  { %786 = vmatpush.bf16.msrb.mxu1 %v1247_v47  ;;  %v1287_v47 = vor.u32 %v1641_v40, %v1286_v39  ;;  %v1683_v7 = vld [vmem:[#allocation2 + $0x298] sm:$0xf0]  ;;  %v1250_v13 = vld [vmem:[#allocation2 + $0xf8] sm:$0xf]  ;;  %v1656_v19 = vld [vmem:[#allocation2 + $0x1c0] sm:$0xf0] }
  0x45   :  { %799 = vmatpush.bf16.msrb.mxu2 %v1343_v48  ;;  %v1383_v48 = vor.u32 %v1665_v43, %v1382_v42  ;;  %v1455_v16 = vor.u32 %v1683_v7, %v1454_v5  ;;  %v1442_v20 = vld [vmem:[#allocation2 + $0x278] sm:$0xf]  ;;  %v1142_v25 = vld [vmem:[#allocation2 + $0x20] sm:$0xf]  ;;  %v1605_v26 = vld [vmem:[#allocation2 + $0x28] sm:$0xf0] }
  0x46   :  { %812 = vmatpush.bf16.msrb.mxu3 %v1439_v52  ;;  %v1479_v52 = vor.u32 %v1689_v45, %v1478_v44  ;;  %v1238_v27 = vld [vmem:[#allocation2 + $0xe0] sm:$0xf]  ;;  %v1629_v29 = vld [vmem:[#allocation2 + $0xe8] sm:$0xf0]  ;;  %v1602_v38 = vld [vmem:[#allocation2 + $0x10] sm:$0xf0] }
  0x47   :  { %774 = vmatpush.bf16.msrb.mxu0 %v1139_v58  ;;  %v1179_v58 = vor.u32 %v1614_v50, %v1178_v49  ;;  %v1334_v30 = vld [vmem:[#allocation2 + $0x1a0] sm:$0xf]  ;;  %v1653_v31 = vld [vmem:[#allocation2 + $0x1a8] sm:$0xf0]  ;;  %v1239_v35 = vor.u32 %v1629_v29, %v1238_v27  ;;  %v1226_v39 = vld [vmem:[#allocation2 + $0xc8] sm:$0xf] }
  0x48   :  { %787 = vmatpush.bf16.msrb.mxu1 %v1235_v61  ;;  %v1166_v61 = vld [vmem:[#allocation2 + $0x50] sm:$0xf]  ;;  %v1430_v32 = vld [vmem:[#allocation2 + $0x260] sm:$0xf]  ;;  %v1677_v33 = vld [vmem:[#allocation2 + $0x268] sm:$0xf0] }
  0x49   :  { %800 = vmatpush.bf16.msrb.mxu2 %v1331_v62  ;;  %v1611_v62 = vld [vmem:[#allocation2 + $0x58] sm:$0xf0]  ;;  %v1431_v40 = vor.u32 %v1677_v33, %v1430_v32  ;;  %v1322_v42 = vld [vmem:[#allocation2 + $0x188] sm:$0xf]  ;;  %v1650_v43 = vld [vmem:[#allocation2 + $0x190] sm:$0xf0] }
  0x4a   :  { %813 = vmatpush.bf16.msrb.mxu3 %v1427_v3  ;;  %v1358_v3 = vld [vmem:[#allocation2 + $0x1d0] sm:$0xf]  ;;  %v1167_v8 = vor.u32 %v1611_v62, %v1166_v61  ;;  %v1418_v44 = vld [vmem:[#allocation2 + $0x248] sm:$0xf]  ;;  %v1674_v45 = vld [vmem:[#allocation2 + $0x250] sm:$0xf0] }
  0x4b   :  { %775 = vmatpush.bf16.msrb.mxu0 %v1127_v11  ;;  %v1359_v10 = vor.u32 %v1659_v4, %v1358_v3  ;;  %v1154_v11 = vld [vmem:[#allocation2 + $0x38] sm:$0xf]  ;;  %v1419_v49 = vor.u32 %v1674_v45, %v1418_v44  ;;  %v1701_v53 = vld [vmem:[#allocation4 + $0x28] sm:$0xff]  ;;  %v1700_v54 = vld [vmem:[#allocation4 + $0x20] sm:$0xff] }
  0x4c   :  { %788 = vmatpush.bf16.msrb.mxu1 %v1223_v17  ;;  %v1632_v17 = vld [vmem:[#allocation2 + $0x100] sm:$0xf0]  ;;  %v1703_v50 = vld [vmem:[#allocation4 + $0x38] sm:$0xff]  ;;  %v1710_v55 = vld [vmem:[#allocation4 + $0x70] sm:$0xff] }
  0x4d   :  { %801 = vmatpush.bf16.msrb.mxu2 %v1319_v18  ;;  %v1346_v18 = vld [vmem:[#allocation2 + $0x1b8] sm:$0xf]  ;;  %v1709_v57 = vld [vmem:[#allocation4 + $0x68] sm:$0xff]  ;;  %v1706_v61 = vld [vmem:[#allocation4 + $0x50] sm:$0xff] }
  0x4e   :  { %814 = vmatpush.bf16.msrb.mxu3 %v1415_v21  ;;  %776 = vmatmul.bf16.vlgmr.msrb.gmra.mxu0 %v1832_v14  ;;  %v1680_v21 = vld [vmem:[#allocation2 + $0x280] sm:$0xf0]  ;;  %v1711_v51 = vld [vmem:[#allocation4 + $0x78] sm:$0xff]  ;;  %v1705_v2 = vld [vmem:[#allocation4 + $0x48] sm:$0xff] }
  0x4f   :  { %820 = vmatpush.bf16.msra.mxu0 %v1215_v22  ;;  %789 = vmatmul.bf16.vlgmr.msrb.gmra.mxu1 %v1834_v15  ;;  %v1155_v22 = vor.u32 %v1608_v12, %v1154_v11  ;;  %v1699_v56 = vld [vmem:[#allocation4 + $0x18] sm:$0xff]  ;;  %v1704_v7 = vld [vmem:[#allocation4 + $0x40] sm:$0xff]  ;;  %v1718_v12 = vld [vmem:[#allocation4 + $0xb0] sm:$0xff] }
  0x50   :  { %833 = vmatpush.bf16.msra.mxu1 %v1311_v23  ;;  %802 = vmatmul.bf16.vlgmr.msrb.gmra.mxu2 %v1824_v1  ;;  %v1251_v23 = vor.u32 %v1632_v17, %v1250_v13  ;;  %v1713_v29 = vld [vmem:[#allocation4 + $0x88] sm:$0xff] }
  0x51   :  { %846 = vmatpush.bf16.msra.mxu2 %v1407_v24  ;;  %815 = vmatmul.bf16.vlgmr.msrb.gmra.mxu3 %v1829_v6  ;;  %v1347_v24 = vor.u32 %v1656_v19, %v1346_v18  ;;  %v1717_v19 = vld [vmem:[#allocation4 + $0xa8] sm:$0xff] }
  0x52   :  { %859 = vmatpush.bf16.msra.mxu3 %v1503_v28  ;;  %v1443_v28 = vor.u32 %v1680_v21, %v1442_v20  ;;  %v1716_v21 = vld [vmem:[#allocation4 + $0xa0] sm:$0xff] }
  0x53   :  { %821 = vmatpush.bf16.msra.mxu0 %v1203_v34  ;;  %v1143_v34 = vor.u32 %v1605_v26, %v1142_v25 }
  0x54   :  { %834 = vmatpush.bf16.msra.mxu1 %v1299_v36  ;;  %v1335_v36 = vor.u32 %v1653_v31, %v1334_v30 }
  0x55   :  { %847 = vmatpush.bf16.msra.mxu2 %v1395_v37  ;;  %v1130_v37 = vld [vmem:[#allocation2 + $0x8] sm:$0xf] }
  0x56   :  { %860 = vmatpush.bf16.msra.mxu3 %v1491_v41  ;;  %v1626_v41 = vld [vmem:[#allocation2 + $0xd0] sm:$0xf0] }
  0x57   :  { %822 = vmatpush.bf16.msra.mxu0 %v1191_v46  ;;  %v1131_v46 = vor.u32 %v1602_v38, %v1130_v37 }
  0x58   :  { %835 = vmatpush.bf16.msra.mxu1 %v1287_v47  ;;  %v1227_v47 = vor.u32 %v1626_v41, %v1226_v39 }
  0x59   :  { %848 = vmatpush.bf16.msra.mxu2 %v1383_v48  ;;  %v1323_v48 = vor.u32 %v1650_v43, %v1322_v42 }
  0x5a   :  { %861 = vmatpush.bf16.msra.mxu3 %v1479_v52  ;;  %v1702_v52 = vld [vmem:[#allocation4 + $0x30] sm:$0xff] }
  0x5b   :  { %823 = vmatpush.bf16.msra.mxu0 %v1179_v58  ;;  %v1698_v58 = vld [vmem:[#allocation4 + $0x10] sm:$0xff] }
  0x5c   :  { %836 = vmatpush.bf16.msra.mxu1 %v1275_v59  ;;  %v1697_v59 = vld [vmem:[#allocation4 + $0x8] sm:$0xff] }
  0x5d   :  { %849 = vmatpush.bf16.msra.mxu2 %v1371_v60 }
  0x5e   :  { %862 = vmatpush.bf16.msra.mxu3 %v1467_v0 }
  0x5f   :  { %824 = vmatpush.bf16.msra.mxu0 %v1167_v8 }
  0x60   :  { %837 = vmatpush.bf16.msra.mxu1 %v1263_v9  ;;  %v1719_v9 = vld [vmem:[#allocation4 + $0xb8] sm:$0xff] }
  0x61   :  { %850 = vmatpush.bf16.msra.mxu2 %v1359_v10 }
  0x62   :  { %863 = vmatpush.bf16.msra.mxu3 %v1455_v16 }
  0x63   :  { %825 = vmatpush.bf16.msra.mxu0 %v1155_v22  ;;  %v1715_v22 = vld [vmem:[#allocation4 + $0x98] sm:$0xff] }
  0x64   :  { %838 = vmatpush.bf16.msra.mxu1 %v1251_v23 }
  0x65   :  { %851 = vmatpush.bf16.msra.mxu2 %v1347_v24  ;;  %v1714_v24 = vld [vmem:[#allocation4 + $0x90] sm:$0xff] }
  0x66   :  { %864 = vmatpush.bf16.msra.mxu3 %v1443_v28 }
  0x67   :  { %826 = vmatpush.bf16.msra.mxu0 %v1143_v34 }
  0x68   :  { %839 = vmatpush.bf16.msra.mxu1 %v1239_v35  ;;  %v1712_v35 = vld [vmem:[#allocation4 + $0x80] sm:$0xff] }
  0x69   :  { %852 = vmatpush.bf16.msra.mxu2 %v1335_v36 }
  0x6a   :  { %865 = vmatpush.bf16.msra.mxu3 %v1431_v40 }
  0x6b   :  { %827 = vmatpush.bf16.msra.mxu0 %v1131_v46 }
  0x6c   :  { %840 = vmatpush.bf16.msra.mxu1 %v1227_v47 }
  0x6d   :  { %853 = vmatpush.bf16.msra.mxu2 %v1323_v48 }
  0x6e   :  { %866 = vmatpush.bf16.msra.mxu3 %v1419_v49  ;;  %828 = vmatmul.bf16.vlgmr.msra.gmra.mxu0 %v1832_v14  ;;  %v1708_v14 = vld [vmem:[#allocation4 + $0x60] sm:$0xff] }
  0x6f   :  { %1074 = vmatpush.bf16.msrb.mxu0 %v1703_v50  ;;  %841 = vmatmul.bf16.vlgmr.msra.gmra.mxu1 %v1834_v15  ;;  %v1696_v15 = vld [vmem:[#allocation4] sm:$0xff] }
  0x70   :  { %1087 = vmatpush.bf16.msrb.mxu1 %v1711_v51  ;;  %854 = vmatmul.bf16.vlgmr.msra.gmra.mxu2 %v1824_v1  ;;  %v1707_v1 = vld [vmem:[#allocation4 + $0x58] sm:$0xff] }
  0x71   :  { %867 = vmatmul.bf16.vlgmr.msra.gmra.mxu3 %v1829_v6  ;;  %v182_v6 = vld [vmem:[%s1858_s2] sm:$0x7]  ;;  %1100 = vmatpush.bf16.msrb.mxu2 %v1719_v9 }
  0x72   :  { %v184_v60 = vperm.slane %v182_v6, 0  ;;  %v185_v23 = vperm.slane %v182_v6, 1  ;;  %v186_v41 = vperm.slane %v182_v6, 2 }
  0x73   :  { %1075 = vmatpush.bf16.msrb.mxu0 %v1702_v52 }
  0x74   :  { %1088 = vmatpush.bf16.msrb.mxu1 %v1710_v55 }
  0x75   :  { %1101 = vmatpush.bf16.msrb.mxu2 %v1718_v12 }
  0x77   :  { %1076 = vmatpush.bf16.msrb.mxu0 %v1701_v53 }
  0x78   :  { %1089 = vmatpush.bf16.msrb.mxu1 %v1709_v57 }
  0x79   :  { %1102 = vmatpush.bf16.msrb.mxu2 %v1717_v19 }
  0x7b   :  { %1077 = vmatpush.bf16.msrb.mxu0 %v1700_v54 }
  0x7c   :  { %1090 = vmatpush.bf16.msrb.mxu1 %v1708_v14 }
  0x7d   :  { %1103 = vmatpush.bf16.msrb.mxu2 %v1716_v21 }
  0x7f   :  { %1078 = vmatpush.bf16.msrb.mxu0 %v1699_v56 }
  0x80   :  { %1091 = vmatpush.bf16.msrb.mxu1 %v1707_v1 }
  0x81   :  { %1104 = vmatpush.bf16.msrb.mxu2 %v1715_v22 }
  0x83   :  { %1079 = vmatpush.bf16.msrb.mxu0 %v1698_v58 }
  0x84   :  { %1092 = vmatpush.bf16.msrb.mxu1 %v1706_v61 }
  0x85   :  { %1105 = vmatpush.bf16.msrb.mxu2 %v1714_v24 }
  0x87   :  { %1080 = vmatpush.bf16.msrb.mxu0 %v1697_v59  ;;  %v1726_v59 = vld [vmem:[%s1860_s4] ss:$0 sm:$0xff] }
  0x88   :  { %1093 = vmatpush.bf16.msrb.mxu1 %v1705_v2 }
  0x89   :  { %1106 = vmatpush.bf16.msrb.mxu2 %v1713_v29 }
  0x8b   :  { %1081 = vmatpush.bf16.msrb.mxu0 %v1696_v15 }
  0x8c   :  { %1094 = vmatpush.bf16.msrb.mxu1 %v1704_v7 }
  0x8d   :  { %1107 = vmatpush.bf16.msrb.mxu2 %v1712_v35 }
  0xab   :  { %v725_v62 = vpop.f32.mrf.mxu0 }
  0xac   :  { %v726_v63 = vadd.f32 %v725_v62, %v184_v60  ;;  %v738_v0 = vpop.f32.mrf.mxu1 }
  0xae   :  { %v739_v3 = vadd.f32 %v738_v0, %v726_v63 }
  0xb3   :  { %v751_v4 = vpop.f32.mrf.mxu2  ;;  %v727_v11 = vpop.f32.mrf.mxu0 }
  0xb4   :  { %v752_v5 = vadd.f32 %v751_v4, %v739_v3  ;;  %v764_v8 = vpop.f32.mrf.mxu3  ;;  %v740_v16 = vpop.f32.mrf.mxu1 }
  0xb6   :  { %v765_v10 = vadd.f32 %v764_v8, %v752_v5 }
  0xb8   :  { %v872_v13 = vmax.f32 %v765_v10, 0.0 }
  0xba   :  { %v875_v17 = vpack.c.bf16 %v872_v13, %v872_v13 }
  0xbb   :  { %v753_v18 = vpop.f32.mrf.mxu2 }
  0xbc   :  { %1082 = vmatmul.bf16.vlgmr.msrb.gmra.mxu0 %v875_v17  ;;  %v766_v20 = vpop.f32.mrf.mxu3 }
  0xcb   :  { %v777_v25 = vpop.f32.mrf.mxu0 }
  0xcc   :  { %v778_v26 = vadd.f32 %v777_v25, %v185_v23  ;;  %v790_v27 = vpop.f32.mrf.mxu1 }
  0xce   :  { %v791_v28 = vadd.f32 %v790_v27, %v778_v26 }
  0xd3   :  { %v803_v30 = vpop.f32.mrf.mxu2  ;;  %v779_v34 = vpop.f32.mrf.mxu0 }
  0xd4   :  { %v804_v31 = vadd.f32 %v803_v30, %v791_v28  ;;  %v816_v32 = vpop.f32.mrf.mxu3  ;;  %v792_v36 = vpop.f32.mrf.mxu1 }
  0xd6   :  { %v817_v33 = vadd.f32 %v816_v32, %v804_v31 }
  0xd8   :  { %v873_v37 = vmax.f32 %v817_v33, 0.0 }
  0xda   :  { %v876_v38 = vpack.c.bf16 %v873_v37, %v873_v37 }
  0xdb   :  { %v805_v39 = vpop.f32.mrf.mxu2 }
  0xdc   :  { %1095 = vmatmul.bf16.vlgmr.msrb.gmra.mxu1 %v876_v38  ;;  %v818_v40 = vpop.f32.mrf.mxu3 }
  0xeb   :  { %v829_v42 = vpop.f32.mrf.mxu0 }
  0xec   :  { %v830_v43 = vadd.f32 %v829_v42, %v186_v41  ;;  %v842_v44 = vpop.f32.mrf.mxu1 }
  0xee   :  { %v843_v45 = vadd.f32 %v842_v44, %v830_v43 }
  0xf3   :  { %v855_v46 = vpop.f32.mrf.mxu2  ;;  %v831_v49 = vpop.f32.mrf.mxu0 }
  0xf4   :  { %v856_v47 = vadd.f32 %v855_v46, %v843_v45  ;;  %v868_v48 = vpop.f32.mrf.mxu3  ;;  %v844_v50 = vpop.f32.mrf.mxu1 }
  0xf6   :  { %v869_v51 = vadd.f32 %v868_v48, %v856_v47 }
  0xf8   :  { %v874_v52 = vmax.f32 %v869_v51, 0.0 }
  0xfa   :  { %v877_v53 = vpack.c.bf16 %v874_v52, %v874_v52 }
  0xfb   :  { %v857_v54 = vpop.f32.mrf.mxu2 }
  0xfc   :  { %v870_v55 = vpop.f32.mrf.mxu3  ;;  %1108 = vmatmul.bf16.vlgmr.msrb.gmra.mxu2 %v877_v53 }
 0x139   :  { %v1083_v56 = vpop.f32.mrf.mxu0 }
 0x13a   :  { %v1084_v1 = vadd.f32 %v1726_v59, %v1083_v56 }
 0x141   :  { %v1085_v57 = vpop.f32.mrf.mxu0 }
 0x159   :  { %v1096_v58 = vpop.f32.mrf.mxu1 }
 0x15a   :  { %v1097_v15 = vadd.f32 %v1096_v58, %v1084_v1 }
 0x161   :  { %v1098_v14 = vpop.f32.mrf.mxu1 }
 0x17f   :  { %v1109_v6 = vpop.f32.mrf.mxu2 }
 0x180   :  { %v1110_v60 = vadd.f32 %v1109_v6, %v1097_v15 }
 0x182   :  { %1113 = vst [vmem:[%s1861_s5] sm:$0xff] %v1110_v60 }
 0x187   :  { %v1111_v61 = vpop.f32.mrf.mxu2 }
 0x188   :  { %1118 = vsyncpa [#allocation3], 1 }
 0x189   :  { %1119 = vsyncpa [#allocation5], 1 }

</bundles_post_ra>
